<compile_context>
chip_gen: v7x
topology: tpu7x:2x2x1
jax: 0.10.0
libtpu: 0.0.40
codegen_flags: <defaults>
</compile_context>

<pallas_src>
import functools

import jax
import jax.numpy as jnp
from jax.experimental import pallas as pl
from jax.experimental.pallas import tpu as pltpu

BN_EPS = 1e-5


# --------------------------------------------------------------------------
# Kernel
# --------------------------------------------------------------------------
def edge_mlp_kernel(n_hidden, src_ref, dest_ref, edge_ref, w_ref, b_ref, o_ref):
    """Fused concat + (BN-folded) MLP over one lane-dense row tile.

    src/dest/edge refs: (tm, Dp) lane-dense views (Dp = 128 for D = 32).
    w_ref: ((3 + n_hidden) * Dp, Dp) -- rows [0, 3Dp) are the fused layer-0
           slab, rows [ (3+j)Dp, (4+j)Dp ) are hidden/final linear j+1.
    b_ref: (n_hidden + 1, 1, Dp) -- folded biases per linear layer.
    """
    f32 = jnp.float32
    dp = o_ref.shape[-1]

    # Layer 0: single MXU weight load / single result pop instead of 3 dots.
    x = jnp.concatenate(
        [src_ref[...].astype(f32),
         dest_ref[...].astype(f32),
         edge_ref[...].astype(f32)], axis=-1)                     # (tm, 3*Dp)
    h = jnp.dot(x, w_ref[0:3 * dp, :], preferred_element_type=f32) + b_ref[0]

    for j in range(n_hidden):
        # SiLU (BN folded into the next Linear; Dropout identity in eval mode).
        h = h * jax.nn.sigmoid(h)
        h = (jnp.dot(h, w_ref[(3 + j) * dp:(4 + j) * dp, :],
                     preferred_element_type=f32)
             + b_ref[j + 1])

    o_ref[...] = h.astype(o_ref.dtype)


# --------------------------------------------------------------------------
# Parameter construction / folding / lane-dense packing
# --------------------------------------------------------------------------
def init_edge_model_params(key, dim_hidden, n_hidden):
    """Deterministic synthetic parameters in PyTorch-equivalent layout.

    Per linear k: W_k (in, out), b_k (1, out); for k < n_hidden additionally
    gamma, beta, running_mean, running_var (each (1, out)).
    """
    layer_vec = [3 * dim_hidden] + n_hidden * [dim_hidden] + [dim_hidden]
    params = []
    for k in range(len(layer_vec) - 1):
        d_in, d_out = layer_vec[k], layer_vec[k + 1]
        key, kw, kb, kg, kbt, krm, krv = jax.random.split(key, 7)
        w = (jax.random.normal(kw, (d_in, d_out), jnp.float32)
             * (1.0 / jnp.sqrt(d_in)))
        b = jax.random.normal(kb, (1, d_out), jnp.float32) * 0.1
        params += [w, b]
        if k != len(layer_vec) - 2:
            gamma = 1.0 + 0.1 * jax.random.normal(kg, (1, d_out), jnp.float32)
            beta = 0.1 * jax.random.normal(kbt, (1, d_out), jnp.float32)
            run_mean = 0.1 * jax.random.normal(krm, (1, d_out), jnp.float32)
            run_var = jnp.abs(
                1.0 + 0.1 * jax.random.normal(krv, (1, d_out), jnp.float32))
            params += [gamma, beta, run_mean, run_var]
    return params


def fold_and_pack_params(params, n_hidden, dim_hidden, repack):
    """Fold eval BN into the following Linear, block-diag repack, pack to 2 arrays."""
    D = dim_hidden
    R = repack
    Dp = R * D

    p = 0
    Ws, bs, bns = [], [], []
    for k in range(n_hidden + 1):
        W, b = params[p], params[p + 1]
        p += 2
        Ws.append(W)
        bs.append(b.reshape(-1))
        if k != n_hidden:
            g, be, rm, rv = (x.reshape(-1) for x in params[p:p + 4])
            p += 4
            bns.append((g, be, rm, rv))

    # Fold BN_k (after SiLU of layer k) into Linear_{k+1}.
    Wf = [Ws[0]]            # (3D, D)
    bf = [bs[0]]
    for k in range(n_hidden):
        g, be, rm, rv = bns[k]
        scale = g * jax.lax.rsqrt(rv + BN_EPS)      # (D,)
        shift = be - rm * scale                     # (D,)
        Wk1 = Ws[k + 1]                             # (D, D)
        Wf.append(scale[:, None] * Wk1)
        bf.append(bs[k + 1] + shift @ Wk1)

    def block_diag(w):
        # (D, D) -> (Dp, Dp): R copies of w on the diagonal (exact, zeros elsewhere).
        if R == 1:
            return w
        return jnp.kron(jnp.eye(R, dtype=w.dtype), w)

    # Layer-0 slab: three block-diag row blocks (src / dest / edge) stacked as rows,
    # followed by the folded hidden / final linears.
    w_rows = [block_diag(Wf[0][i * D:(i + 1) * D, :]) for i in range(3)]
    w_rows += [block_diag(Wf[k]) for k in range(1, n_hidden + 1)]
    w_stack = jnp.concatenate(w_rows, axis=0)          # ((3+n_hidden)*Dp, Dp)

    b_stack = jnp.stack([jnp.tile(b, (R,)) for b in bf], axis=0)[:, None, :]
    return w_stack, b_stack                            # (n_hidden+1, 1, Dp)


# --------------------------------------------------------------------------
# Wrapper
# --------------------------------------------------------------------------
def _round_up(a, m):
    return ((a + m - 1) // m) * m


def edge_model_forward(src, dest, edge_attr, params, n_hidden, *,
                       tm_max=1024, target_blocks=4):
    E, D = src.shape
    assert dest.shape == (E, D) and edge_attr.shape == (E, D)

    # Lane-dense repack factor: view (E, D) as (E/R, R*D) so the last dim is 128.
    R = 128 // D if (D < 128 and 128 % D == 0) else 1
    Dp = R * D

    w_stack, b_stack = fold_and_pack_params(params, n_hidden, D, R)

    # Minimal pad so E divides R (no-op / no copy in the common case E % R == 0).
    E_r = _round_up(E, R)
    if E_r != E:
        pad = ((0, E_r - E), (0, 0))
        src = jnp.pad(src, pad)
        dest = jnp.pad(dest, pad)
        edge_attr = jnp.pad(edge_attr, pad)

    rows = E_r // R
    src_v = src.reshape(rows, Dp)          # free row-major reshapes (bitcasts)
    dest_v = dest.reshape(rows, Dp)
    edge_v = edge_attr.reshape(rows, Dp)

    # Row tile: big enough to amortize per-grid-step overhead, but keep at least
    # ~target_blocks grid steps so v7x can shard the "parallel" axis over both
    # TensorCores.  No padding to a tile multiple: cdiv grid + ragged last block.
    tm_eff = min(tm_max, max(8, _round_up(pl.cdiv(rows, target_blocks), 8)))
    grid = (pl.cdiv(rows, tm_eff),)

    row_spec = pl.BlockSpec((tm_eff, Dp), lambda i: (i, 0))
    w_spec = pl.BlockSpec(w_stack.shape, lambda i: (0, 0))
    b_spec = pl.BlockSpec(b_stack.shape, lambda i: (0, 0, 0))
    out_spec = pl.BlockSpec((tm_eff, Dp), lambda i: (i, 0))

    kernel = functools.partial(edge_mlp_kernel, n_hidden)
    out = pl.pallas_call(
        kernel,
        out_shape=jax.ShapeDtypeStruct((rows, Dp), src.dtype),
        grid=grid,
        in_specs=[row_spec, row_spec, row_spec, w_spec, b_spec],
        out_specs=out_spec,
        # VMEM at defaults: ~7 MiB peak at tm_max=1024, D=32 (fits v5e's 16 MiB
        # scoped default).  For much larger dim_hidden, raise vmem_limit_bytes
        # or stream weights per layer.
        compiler_params=pltpu.CompilerParams(
            dimension_semantics=("parallel",)),
    )(src_v, dest_v, edge_v, w_stack, b_stack)

    out = out.reshape(E_r, D)              # free reshape back to (E_r, D)
    return out[:E] if E_r != E else out


# --------------------------------------------------------------------------
# Pure-JAX reference (original, unfolded eval-mode semantics)
# --------------------------------------------------------------------------
def edge_model_reference(src, dest, edge_attr, params, n_hidden):
    h = jnp.concatenate([src, dest, edge_attr], axis=1).astype(jnp.float32)
    p = 0
    for k in range(n_hidden + 1):
        w, b = params[p], params[p + 1]
        p += 2
        h = h @ w + b
        if k != n_hidden:
            h = h * jax.nn.sigmoid(h)                               # SiLU
            g, be, rm, rv = params[p], params[p + 1], params[p + 2], params[p + 3]
            p += 4
            h = (h - rm) * jax.lax.rsqrt(rv + BN_EPS) * g + be      # BN (eval)
            # Dropout: identity in eval mode
    return h


if __name__ == "__main__":
    # args.n_hidden = 2, args.dim_hidden = 32  (small, forward-consistent)
    n_hidden = 2
    dim_hidden = 32
    num_edges = 256  # E (divisible by the lane-dense repack factor 128/32 = 4)

    key = jax.random.PRNGKey(0)
    k_src, k_dst, k_edge, k_par = jax.random.split(key, 4)
    src = jax.random.normal(k_src, (num_edges, dim_hidden), jnp.float32)
    dest = jax.random.normal(k_dst, (num_edges, dim_hidden), jnp.float32)
    edge_attr = jax.random.normal(k_edge, (num_edges, dim_hidden), jnp.float32)

    params = init_edge_model_params(k_par, dim_hidden, n_hidden)

    out = edge_model_forward(src, dest, edge_attr, params, n_hidden)
    out = jax.block_until_ready(out)

    ref = edge_model_reference(src, dest, edge_attr, params, n_hidden)
    assert out.shape == (num_edges, dim_hidden)
    assert jnp.allclose(out, ref, atol=5e-4, rtol=5e-4), "mismatch vs reference"

    # TODO(synk): training-mode BatchNorm (batch statistics) and Dropout RNG are
    # intentionally not reproduced; eval-mode semantics are implemented.
    print("KERNEL_OK")
</pallas_src>

<mosaic_0001>
module attributes {stable_mosaic.version = 11 : i64} {
  func.func @edge_mlp_kernel(%arg0: i32, %arg1: memref<16x128xf32, #tpu.memory_space<vmem>>, %arg2: memref<16x128xf32, #tpu.memory_space<vmem>>, %arg3: memref<16x128xf32, #tpu.memory_space<vmem>>, %arg4: memref<640x128xf32, #tpu.memory_space<vmem>>, %arg5: memref<3x1x128xf32, #tpu.memory_space<vmem>>, %arg6: memref<16x128xf32, #tpu.memory_space<vmem>>) attributes {dimension_semantics = [#tpu.dimension_semantics<parallel>], iteration_bounds = array<i64: 4>, scalar_prefetch = 0 : i64, scratch_operands = 0 : i64, tpu.core_type = #tpu.core_type<tc>, window_params = [{transform_indices = @transform_0, window_bounds = array<i64: 16, 128>}, {transform_indices = @transform_1, window_bounds = array<i64: 16, 128>}, {transform_indices = @transform_2, window_bounds = array<i64: 16, 128>}, {pipeline_mode = #tpu.pipeline_mode<synchronous>, transform_indices = @transform_3, window_bounds = array<i64: 640, 128>}, {pipeline_mode = #tpu.pipeline_mode<synchronous>, transform_indices = @transform_4, window_bounds = array<i64: 3, 1, 128>}, {transform_indices = @transform_5, window_bounds = array<i64: 16, 128>}]} {
    %c0 = arith.constant 0 : index
    %c0_0 = arith.constant 0 : index
    %0 = vector.load %arg1[%c0, %c0_0] : memref<16x128xf32, #tpu.memory_space<vmem>>, vector<16x128xf32>
    %c0_1 = arith.constant 0 : index
    %c0_2 = arith.constant 0 : index
    %1 = vector.load %arg2[%c0_1, %c0_2] : memref<16x128xf32, #tpu.memory_space<vmem>>, vector<16x128xf32>
    %c0_3 = arith.constant 0 : index
    %c0_4 = arith.constant 0 : index
    %2 = vector.load %arg3[%c0_3, %c0_4] : memref<16x128xf32, #tpu.memory_space<vmem>>, vector<16x128xf32>
    %3 = tpu.concatenate %0, %1, %2 in 1 : vector<16x128xf32>, vector<16x128xf32>, vector<16x128xf32> -> vector<16x384xf32>
    %c0_5 = arith.constant 0 : index
    %c0_6 = arith.constant 0 : index
    %4 = vector.load %arg4[%c0_5, %c0_6] : memref<640x128xf32, #tpu.memory_space<vmem>>, vector<384x128xf32>
    %cst = arith.constant dense<0.000000e+00> : vector<16x128xf32>
    %5 = tpu.matmul %3, %4, %cst {dimension_numbers = #tpu.dot_dimension_numbers<[1], [0], [0], [1], [0, 0, 1, 1], [], []>} : vector<16x384xf32>, vector<384x128xf32>, vector<16x128xf32> -> vector<16x128xf32>
    %c0_7 = arith.constant 0 : index
    %c0_8 = arith.constant 0 : index
    %c0_9 = arith.constant 0 : index
    %6 = vector.load %arg5[%c0_7, %c0_8, %c0_9] : memref<3x1x128xf32, #tpu.memory_space<vmem>>, vector<1x1x128xf32>
    %7 = vector.shape_cast %6 : vector<1x1x128xf32> to vector<1x128xf32>
    %8 = vector.broadcast %7 : vector<1x128xf32> to vector<16x128xf32>
    %9 = arith.addf %5, %8 : vector<16x128xf32>
    %10 = arith.negf %9 : vector<16x128xf32>
    %11 = math.exp %10 : vector<16x128xf32>
    %cst_10 = arith.constant 1.000000e+00 : f32
    %12 = vector.broadcast %cst_10 : f32 to vector<16x128xf32>
    %13 = arith.addf %12, %11 : vector<16x128xf32>
    %14 = arith.divf %12, %13 : vector<16x128xf32>
    %15 = arith.mulf %9, %14 : vector<16x128xf32>
    %c384 = arith.constant 384 : index
    %c0_11 = arith.constant 0 : index
    %16 = vector.load %arg4[%c384, %c0_11] : memref<640x128xf32, #tpu.memory_space<vmem>>, vector<128x128xf32>
    %cst_12 = arith.constant dense<0.000000e+00> : vector<16x128xf32>
    %17 = tpu.matmul %15, %16, %cst_12 {dimension_numbers = #tpu.dot_dimension_numbers<[1], [0], [0], [1], [0, 0, 1, 1], [], []>} : vector<16x128xf32>, vector<128x128xf32>, vector<16x128xf32> -> vector<16x128xf32>
    %c1 = arith.constant 1 : index
    %c0_13 = arith.constant 0 : index
    %c0_14 = arith.constant 0 : index
    %18 = vector.load %arg5[%c1, %c0_13, %c0_14] : memref<3x1x128xf32, #tpu.memory_space<vmem>>, vector<1x1x128xf32>
    %19 = vector.shape_cast %18 : vector<1x1x128xf32> to vector<1x128xf32>
    %20 = vector.broadcast %19 : vector<1x128xf32> to vector<16x128xf32>
    %21 = arith.addf %17, %20 : vector<16x128xf32>
    %22 = arith.negf %21 : vector<16x128xf32>
    %23 = math.exp %22 : vector<16x128xf32>
    %cst_15 = arith.constant 1.000000e+00 : f32
    %24 = vector.broadcast %cst_15 : f32 to vector<16x128xf32>
    %25 = arith.addf %24, %23 : vector<16x128xf32>
    %26 = arith.divf %24, %25 : vector<16x128xf32>
    %27 = arith.mulf %21, %26 : vector<16x128xf32>
    %c512 = arith.constant 512 : index
    %c0_16 = arith.constant 0 : index
    %28 = vector.load %arg4[%c512, %c0_16] : memref<640x128xf32, #tpu.memory_space<vmem>>, vector<128x128xf32>
    %cst_17 = arith.constant dense<0.000000e+00> : vector<16x128xf32>
    %29 = tpu.matmul %27, %28, %cst_17 {dimension_numbers = #tpu.dot_dimension_numbers<[1], [0], [0], [1], [0, 0, 1, 1], [], []>} : vector<16x128xf32>, vector<128x128xf32>, vector<16x128xf32> -> vector<16x128xf32>
    %c2 = arith.constant 2 : index
    %c0_18 = arith.constant 0 : index
    %c0_19 = arith.constant 0 : index
    %30 = vector.load %arg5[%c2, %c0_18, %c0_19] : memref<3x1x128xf32, #tpu.memory_space<vmem>>, vector<1x1x128xf32>
    %31 = vector.shape_cast %30 : vector<1x1x128xf32> to vector<1x128xf32>
    %32 = vector.broadcast %31 : vector<1x128xf32> to vector<16x128xf32>
    %33 = arith.addf %29, %32 : vector<16x128xf32>
    %c0_20 = arith.constant 0 : index
    %c0_21 = arith.constant 0 : index
    %34 = vector.load %arg6[%c0_20, %c0_21] : memref<16x128xf32, #tpu.memory_space<vmem>>, vector<16x128xf32>
    tpu.vector_store %arg6[%c0_20, %c0_21], %33 {strides = array<i32>} : memref<16x128xf32, #tpu.memory_space<vmem>>, vector<16x128xf32>,
    return
  }
  func.func @transform_0(%arg0: i32) -> (i32, i32) {
    %c0_i32 = arith.constant 0 : i32
    %c0_i32_0 = arith.constant 0 : i32
    return %arg0, %c0_i32 : i32, i32
  }
  func.func @transform_1(%arg0: i32) -> (i32, i32) {
    %c0_i32 = arith.constant 0 : i32
    %c0_i32_0 = arith.constant 0 : i32
    return %arg0, %c0_i32 : i32, i32
  }
  func.func @transform_2(%arg0: i32) -> (i32, i32) {
    %c0_i32 = arith.constant 0 : i32
    %c0_i32_0 = arith.constant 0 : i32
    return %arg0, %c0_i32 : i32, i32
  }
  func.func @transform_3(%arg0: i32) -> (i32, i32) {
    %c0_i32 = arith.constant 0 : i32
    %c0_i32_0 = arith.constant 0 : i32
    %c0_i32_1 = arith.constant 0 : i32
    return %c0_i32, %c0_i32_0 : i32, i32
  }
  func.func @transform_4(%arg0: i32) -> (i32, i32, i32) {
    %c0_i32 = arith.constant 0 : i32
    %c0_i32_0 = arith.constant 0 : i32
    %c0_i32_1 = arith.constant 0 : i32
    %c0_i32_2 = arith.constant 0 : i32
    return %c0_i32, %c0_i32_0, %c0_i32_1 : i32, i32, i32
  }
  func.func @transform_5(%arg0: i32) -> (i32, i32) {
    %c0_i32 = arith.constant 0 : i32
    %c0_i32_0 = arith.constant 0 : i32
    return %arg0, %c0_i32 : i32, i32
  }
}

</mosaic_0001>

<bundles_post_ra>
// kernel: tpu_custom_call.1
= control target key start
LH: loop header
LB: loop body
LE: loop exit
PB: predicated region body
PF: predicated region fallthrough
CT: control target
= control target key end

     0   :  { %s1924_s0 = inlined_call_operand.hbm [shape: f32[64,128], index: 0, kind: input, shape index: {}]   ;;  %s1925_s1 = inlined_call_operand.hbm [shape: f32[64,128], index: 1, kind: input, shape index: {}]   ;;  %s1926_s2 = inlined_call_operand.hbm [shape: f32[64,128], index: 2, kind: input, shape index: {}]   ;;  %s1927_s3 = inlined_call_operand.hbm [shape: f32[640,128], index: 3, kind: input, shape index: {}]   ;;  %s1928_s4 = inlined_call_operand.vmem [shape: f32[3,1,128], index: 4, kind: input, shape index: {}]   ;;  %s1929_s5 = inlined_call_operand.hbm [shape: f32[64,128], index: 5, kind: output, shape index: {}]  }
   0x1   :  { %1949 = sst [smem:[#allocation21_spill]] %s1924_s0 }
   0x2   :  { %1950 = sst [smem:[#allocation22_spill]] %s1925_s1 }
   0x3   :  { %10 = vsyncpa [#allocation3], 0 }
   0x4   :  { %12 = vsyncpa [#allocation3 + $0x1], 0 }
   0x5   :  { %13 = vsyncpa [#allocation6], 0 }
   0x6   :  { %15 = vsyncpa [#allocation6 + $0x1], 0 }
   0x7   :  { %16 = vsyncpa [#allocation9], 0 }
   0x8   :  { %17 = vsyncpa [#allocation4], 0 }
   0x9   :  { %19 = vsyncpa [#allocation4 + $0x1], 0  ;;  %s1600_s18 = smov 0   ;;  %s1602_s19 = smov 0  }
   0xa   :  { %s1604_s20 = smov 0   ;;  %s1606_s21 = smov 0  }
   0xb LB: > { %1951 = sst [smem:[#allocation15_spill]] %s1547_s18  ;;  %s1621_s22 = sadd.s32 1, %s1559_s21   ;;  %s1559_s21 = sphi %s1606_s21, %s1981_s21   ;;  %s1555_s20 = sphi %s1604_s20, %s1983_s20   ;;  %s1551_s19 = sphi %s1602_s19, %s1985_s19   ;;  %s1547_s18 = sphi %s1600_s18, %s1984_s18  }
   0xc   : > { %1952 = sst [smem:[#allocation16_spill]] %s1555_s20  ;;  %s32_s23 = sadd.s32 1, %s1555_s20 }
   0xd   : > { %1953 = sst [smem:[#allocation17_spill]] %s1559_s21  ;;  %s29_s24 = ssub.s32 %s1559_s21, %s1621_s22 }
   0xe   : > { %1954 = sst [smem:[#allocation18_spill]] %s1621_s22  ;;  %p1930_p0 = scmp.ne.s32.totalorder %s1555_s20, %s1551_s19 }
   0xf   : > { %p30_p1 = scmp.eq.s32.totalorder %s29_s24, 0  ;;  %p40_p2 = scmp.eq.s32.totalorder %s1559_s21, 0 }
  0x10   : > { %p1311_p4 = scmp.lt.s32.totalorder %s1559_s21, 4  ;;  %s205_s26 = sand.u32 1, %s1555_s20  }
  0x11   : > { %s1630_s25 = scalar_select %p30_p1, %s1555_s20, %s32_s23  }
  0x12   : > { %p41_p3 = por %p40_p2, %p1930_p0  ;;  %s1639_s27 = sshll.u32 %s205_s26, 4 }
  0x13   : > { %1955 = sst [smem:[#allocation19_spill]] %s1630_s25  ;;  %s1642_s28 = sshll.u32 %s1559_s21, 8 }
  0x14   : > { %p1644_p5 = pnand %p1311_p4, %p41_p3  ;;  %s226_s30 = sand.u32 1, %s1559_s21  }
  0x15   : > { %s1957_s1 = sld [smem:[#allocation22_spill]]  ;;  %s230_s9 = scalar_lea.vmem [#allocation5], %s1639_s27 }
  0x16   : > { %s1956_s29 = scalar_select %p1644_p5, 1, 0 }
  0x17   : > { %s237_s10 = sshll.u32 %s230_s9, 4  ;;  %s1658_s11 = scalar_lea.sflag [#allocation6], %s226_s30  ;;  %s1656_s10 = int_to_ptr.vmem [resolvable:$true] %s237_s10 }
  0x18   : > { %p1664_p7 = pneg %p1644_p5 }
  0x1a   : > { %s1958_s13 = scalar_select %p1664_p7, 1, 0 }
  0x1b   : > { %s1653_s8 = scalar_lea.hbm %s1957_s1, %s1642_s28  ;;  %s1372_s16 = scalar_lea.hbm %s1957_s1, 1024 }
  0x1c   : > { %s1367_s12 = scalar_lea.hbm %s1653_s8, 256  ;;  %p1373_p10 = scmp.lt.u32.totalorder %s1653_s8, %s1957_s1 }
  0x1d   : > { %p1368_p6 = scmp.ne.s32.totalorder %s1653_s8, %s1367_s12  ;;  %p1374_p11 = scmp.lt.u32.totalorder %s1372_s16, %s1367_s12 }
  0x1e   : > { %p1376_p13 = scmp.lt.u32.totalorder %s1367_s12, %s1653_s8 }
  0x1f   : > { %p1370_p8 = pnand %p1664_p7, %p1368_p6  ;;  %p1375_p12 = por %p1374_p11, %p1373_p10 }
  0x21   : > { %p1371_p9 = pneg %p1370_p8  ;;  %p1377_p1 = por %p1376_p13, %p1375_p12 }
  0x23   : > { %p1378_p2 = pnand %p1377_p1, %p1371_p9 }
  0x25   : > { %1381 = shalt.err (!%p1378_p2)
}
  0x26   : > { %s1382_s24 = scalar_lea.vmem %s1656_s10, 256  ;;  %s1561_s30 = smov [#allocation5]  }
  0x27   : > { %p1383_p3 = scmp.ne.s32.totalorder %s1656_s10, %s1382_s24  ;;  %s1387_s6 = sshll.u32 %s1561_s30, 4  ;;  %s1388_s6 = int_to_ptr.vmem [resolvable:$false] %s1387_s6 }
  0x28   : > { %s1389_s7 = scalar_lea.vmem %s1388_s6, 512  ;;  %p1390_p8 = scmp.lt.s32.totalorder %s1656_s10, %s1388_s6 }
  0x29   : > { %p1385_p4 = pnand %p1383_p3, %p1664_p7  ;;  %p1391_p0 = scmp.lt.s32.totalorder %s1389_s7, %s1382_s24 }
  0x2b   : > { %p1386_p6 = pneg %p1385_p4  ;;  %p1392_p10 = por %p1391_p0, %p1390_p8 }
  0x2d   : > { %p1393_p11 = pnand %p1392_p10, %p1386_p6 }
  0x2f   : > { %1396 = shalt.err (!%p1393_p11)
}
  0x30   : > { %s1931_s9 = smov 128   ;;  %s1933_s12 = smov 8  }
  0x31   : > { %1302 = dma.hbm_to_vmem [thread:$0]  (!%p1644_p5), %s1653_s8, 256, %s1656_s10, %s1658_s11, %s1931_s9, %s1931_s9, %s1933_s12  }
  0x32   : > { %s1692_s14 = sadd.s32 4294967295, %s1559_s21   ;;  %s918_s15 = sadd.s32 4294967294, %s1559_s21  }
  0x33   : > { %p45_p0 = scmp.ne.s32.totalorder %s1551_s19, %s1547_s18  ;;  %p1937_p9 = scmp.eq.s32.totalorder %s1692_s14, 0 }
  0x34   : > { %p163_p12 = scmp.eq.s32.totalorder %s1692_s14, 3  ;;  %p169_p13 = scmp.eq.s32.totalorder %s918_s15, 3 }
  0x35   : > { %p1701_p1 = por %p1937_p9, %p45_p0  ;;  %p919_p2 = scmp.ge.s32.totalorder %s1559_s21, 1 }
  0x36   : > { %p1960_p3 = scmp.ne.s32.totalorder %s1555_s20, %s1551_s19  ;;  %p1713_p6 = por %p169_p13, %p45_p0 }
  0x37   : > { %s1959_s16 = scalar_select %p1701_p1, 1, 0 }
  0x38   : > { %p1709_p4 = por %p163_p12, %p1960_p3  ;;  %p176_p8 = scmp.lt.s32.totalorder %s1559_s21, 5 }
  0x39   : > { %s1962_s10 = scalar_select %p1713_p6, 1, 0 }
  0x3a   : > { %s1961_s8 = scalar_select %p1709_p4, 1, 0 }
  0x3b   : > { %1963 = sst [smem:[#allocation20_spill]] %s1962_s10  ;;  %p1718_p10 = pnand %p919_p2, %p176_p8 }
  0x3c   : > { %s1564_s23 = smov [#allocation8]   ;;  %s1965_s0 = sld [smem:[#allocation21_spill]] }
  0x3d   : > { %s1964_s17 = scalar_select %p1718_p10, 1, 0 }
  0x3e   : > { %s188_s24 = sshll.u32 %s1564_s23, 4  ;;  %p1292_p11 = pneg %p1718_p10  ;;  %s1722_s24 = int_to_ptr.vmem [resolvable:$true] %s188_s24 }
  0x3f   : > { %s209_s15 = scalar_lea.vmem [#allocation2], %s1639_s27  ;;  %s1743_s23 = scalar_lea.sflag [#allocation3], %s205_s26 }
  0x40   : > { %s216_s9 = sshll.u32 %s209_s15, 4  ;;  %p1735_p0 = pnand %p1292_p11, %p1937_p9  ;;  %s1739_s9 = int_to_ptr.vmem [resolvable:$true] %s216_s9 }
  0x42   : > { %s1730_s7 = scalar_lea.hbm %s1965_s0, %s1642_s28  ;;  %s1402_s25 = scalar_lea.hbm %s1965_s0, 1024 }
  0x43   : > { %s1966_s12 = scalar_select %p1735_p0, 1, 0 }
  0x44   : > { %s1397_s1 = scalar_lea.hbm %s1730_s7, 256  ;;  %p1403_p3 = scmp.lt.u32.totalorder %s1730_s7, %s1965_s0 }
  0x45   : > { %p1398_p12 = scmp.ne.s32.totalorder %s1730_s7, %s1397_s1  ;;  %p1404_p8 = scmp.lt.u32.totalorder %s1402_s25, %s1397_s1 }
  0x46   : > { %p1406_p9 = scmp.lt.u32.totalorder %s1397_s1, %s1730_s7 }
  0x47   : > { %p1400_p13 = pnand %p1398_p12, %p1664_p7  ;;  %p1405_p11 = por %p1404_p8, %p1403_p3 }
  0x49   : > { %p1401_p2 = pneg %p1400_p13  ;;  %p1407_p6 = por %p1406_p9, %p1405_p11 }
  0x4b   : > { %p1408_p4 = pnand %p1407_p6, %p1401_p2 }
  0x4d   : > { %1411 = shalt.err (!%p1408_p4)
}
  0x4e   : > { %s1412_s26 = scalar_lea.vmem %s1739_s9, 256  ;;  %s1565_s30 = smov [#allocation2]  }
  0x4f   : > { %p1413_p12 = scmp.ne.s32.totalorder %s1739_s9, %s1412_s26  ;;  %s1417_s6 = sshll.u32 %s1565_s30, 4  ;;  %s1418_s6 = int_to_ptr.vmem [resolvable:$false] %s1417_s6 }
  0x50   : > { %s1419_s22 = scalar_lea.vmem %s1418_s6, 512  ;;  %p1420_p10 = scmp.lt.s32.totalorder %s1739_s9, %s1418_s6 }
  0x51   : > { %p1415_p13 = pnand %p1413_p12, %p1664_p7  ;;  %p1421_p0 = scmp.lt.s32.totalorder %s1419_s22, %s1412_s26 }
  0x53   : > { %p1416_p1 = pneg %p1415_p13  ;;  %p1422_p3 = por %p1421_p0, %p1420_p10 }
  0x55   : > { %p1423_p8 = pnand %p1422_p3, %p1416_p1 }
  0x57   : > { %1426 = shalt.err (!%p1423_p8)
}
  0x58   : > { %s1967_s1 = smov 8   ;;  %s1968_s25 = smov 128  }
  0x59   : > { %1299 = dma.hbm_to_vmem [thread:$0]  (!%p1644_p5), %s1730_s7, 256, %s1739_s9, %s1743_s23, %s1968_s25, %s1968_s25, %s1967_s1  }
  0x5a   : > { %s1774_s0 = scalar_lea.hbm %s1926_s2, %s1642_s28  ;;  %s1427_s22 = scalar_lea.hbm %s1927_s3, 10240 }
  0x5b   : > { %p1428_p9 = scmp.ne.s32.totalorder %s1927_s3, %s1427_s22  ;;  %p1969_p1 = scmp.ne.s32.totalorder %s1966_s12, 0 }
  0x5c   : > { %p1434_p0 = scmp.lt.u32.totalorder %s1427_s22, %s1927_s3 }
  0x5d   : > { %p1429_p4 = pneg %p1969_p1 }
  0x5f   : > { %p1430_p6 = pnand %p1429_p4, %p1428_p9 }
  0x61   : > { %p1431_p10 = pneg %p1430_p6 }
  0x63   : > { %p1436_p2 = pnand %p1434_p0, %p1431_p10 }
  0x65   : > { %1439 = shalt.err (!%p1436_p2)
}
  0x66   : > { %s1440_s28 = scalar_lea.vmem %s1722_s24, 10240  ;;  %p1448_p3 = scmp.lt.s32.totalorder %s1722_s24, %s1722_s24 }
  0x67   : > { %p1441_p11 = scmp.ne.s32.totalorder %s1722_s24, %s1440_s28  ;;  %p1449_p8 = scmp.lt.s32.totalorder %s1440_s28, %s1440_s28 }
  0x69   : > { %p1443_p12 = pnand %p1441_p11, %p1429_p4  ;;  %p1450_p5 = por %p1449_p8, %p1448_p3 }
  0x6b   : > { %p1444_p13 = pneg %p1443_p12 }
  0x6d   : > { %p1451_p7 = pnand %p1450_p5, %p1444_p13 }
  0x6f   : > { %1454 = shalt.err (!%p1451_p7)
}
  0x70   : > { %1295 = dma.hbm_to_vmem [thread:$0]  (!%p1969_p1), %s1927_s3, 10240, %s1722_s24, [#allocation9], %s1968_s25, %s1968_s25, %s1967_s1  }
  0x71   : > { %s251_s21 = scalar_lea.vmem [#allocation7], %s1639_s27  ;;  %s1455_s10 = scalar_lea.hbm %s1774_s0, 256 }
  0x72   : > { %s258_s9 = sshll.u32 %s251_s21, 4  ;;  %p1456_p5 = scmp.ne.s32.totalorder %s1774_s0, %s1455_s10  ;;  %s1801_s9 = int_to_ptr.vmem [resolvable:$true] %s258_s9 }
  0x73   : > { %p1970_p7 = scmp.ne.s32.totalorder %s1958_s13, 0  ;;  %s1460_s23 = scalar_lea.hbm %s1926_s2, 1024 }
  0x74   : > { %p1461_p6 = scmp.lt.u32.totalorder %s1774_s0, %s1926_s2  ;;  %p1462_p10 = scmp.lt.u32.totalorder %s1460_s23, %s1455_s10 }
  0x75   : > { %p1458_p9 = pnand %p1456_p5, %p1970_p7  ;;  %p1464_p1 = scmp.lt.u32.totalorder %s1455_s10, %s1774_s0 }
  0x76   : > { %p1463_p0 = por %p1462_p10, %p1461_p6 }
  0x77   : > { %p1459_p4 = pneg %p1458_p9 }
  0x78   : > { %p1465_p2 = por %p1464_p1, %p1463_p0 }
  0x7a   : > { %p1466_p11 = pnand %p1465_p2, %p1459_p4 }
  0x7c   : > { %1469 = shalt.err (!%p1466_p11)
}
  0x7d   : > { %s1470_s27 = scalar_lea.vmem %s1801_s9, 256  ;;  %s1566_s24 = smov [#allocation7]  }
  0x7e   : > { %p1471_p12 = scmp.ne.s32.totalorder %s1801_s9, %s1470_s27  ;;  %s1475_s26 = sshll.u32 %s1566_s24, 4  ;;  %s1476_s26 = int_to_ptr.vmem [resolvable:$false] %s1475_s26 }
  0x7f   : > { %s1477_s6 = scalar_lea.vmem %s1476_s26, 512  ;;  %p1478_p8 = scmp.lt.s32.totalorder %s1801_s9, %s1476_s26 }
  0x80   : > { %p1473_p13 = pnand %p1471_p12, %p1970_p7  ;;  %p1479_p5 = scmp.lt.s32.totalorder %s1477_s6, %s1470_s27 }
  0x82   : > { %p1474_p3 = pneg %p1473_p13  ;;  %p1480_p9 = por %p1479_p5, %p1478_p8 }
  0x84   : > { %p1481_p6 = pnand %p1480_p9, %p1474_p3 }
  0x86   : > { %1484 = shalt.err (!%p1481_p6)
}
  0x87   : > { %p1971_p4 = scmp.ne.s32.totalorder %s1956_s29, 0  ;;  %p1972_p7 = scmp.ne.s32.totalorder %s1964_s17, 0 }
  0x88   : > { %s1831_s13 = sand.u32 (!%p1972_p7), 1, %s1551_s19   ;;  %p1973_p10 = scmp.ne.s32.totalorder (!%p1972_p7), %s1959_s16, 0 }
  0x89   : > { %1305 = dma.hbm_to_vmem [thread:$0]  (!%p1971_p4), %s1774_s0, 256, %s1801_s9, %s1658_s11, %s1968_s25, %s1968_s25, %s1967_s1  }
  0x8a   : > { %270 = sbr.rel (%p1972_p7) target bundleno = 912 (0x390), region = 40  ;;  %s1834_s22 = sshll.u32 (!%p1972_p7), %s1831_s13, 4 }
  0x8b   : > { %s273_s29 = scalar_lea.sflag (!%p1972_p7), [#allocation3], %s1831_s13  ;;  %s276_s28 = scalar_lea.vmem (!%p1972_p7), [#allocation2], %s1834_s22 }
  0x91   : > { %1530 = dma.done.wait (%p1973_p10), %s273_s29, 256  }
  0x92   : > { %1532 = vsyncadd (%p1973_p10), %s273_s29, 4294967040  ;;  %s281_s0 = sand.u32 1, %s1692_s14   ;;  %s285_s17 = scalar_lea.vmem [#allocation5], %s1834_s22 }
  0x93   : > { %s282_s11 = scalar_lea.sflag [#allocation6], %s281_s0 }
  0x94   : > { %1534 = dma.done.wait (%p1973_p10), %s282_s11, 512  }
  0x95   : > { %1536 = vsyncadd (%p1973_p10), %s282_s11, 4294966784  ;;  %s294_s1 = scalar_lea.vmem [#allocation7], %s1834_s22  ;;  %p1974_p0 = scmp.eq.s32.totalorder %s1692_s14, 0 }
  0x97   : > { %1538 = dma.done.wait (%p1974_p0), [#allocation9], 10240   ;;  %p1975_p1 = pmov %p1974_p0 }
  0x98   : > { %v361_v0 = vld [vmem:[#allocation8 + $0x80] sm:$0xff]  ;;  %v362_v1 = vld [vmem:[#allocation8 + $0x88] sm:$0xff]  ;;  %v363_v5 = vld [vmem:[#allocation8 + $0x90] sm:$0xff]  ;;  %s334_s21 = scalar_lea.vmem [#allocation10], %s1834_s22  ;;  %s954_s7 = sshll.u32 %s1692_s14, 8 }
  0x99   : > { %1540 = vsyncadd (%p1975_p1), [#allocation9], 4294957056  ;;  %v345_v2 = vld [vmem:[#allocation8] sm:$0xff]  ;;  %v1152_v3 = vpack.c.bf16 %v362_v1, %v361_v0  ;;  %v346_v4 = vld [vmem:[#allocation8 + $0x8] sm:$0xff]  ;;  %s792_s9 = sshll.u32 %s334_s21, 4  ;;  %s1881_s30 = scalar_lea.hbm %s1929_s5, %s954_s7  ;;  %s1876_s9 = int_to_ptr.vmem [resolvable:$true] %s792_s9 }
  0x9a   : > { %v364_v6 = vld [vmem:[#allocation8 + $0x98] sm:$0xff]  ;;  %v1154_v7 = vpack.c.bf16 %v346_v4, %v345_v2  ;;  %v377_v9 = vld [vmem:[#allocation8 + $0x100] sm:$0xff]  ;;  %v378_v10 = vld [vmem:[#allocation8 + $0x108] sm:$0xff]  ;;  %s779_s27 = scalar_lea.sflag [#allocation4], %s1831_s13  ;;  %s1485_s24 = scalar_lea.vmem %s1876_s9, 256 }
  0x9b   : > { %v1156_v8 = vpack.c.bf16 %v364_v6, %v363_v5  ;;  %v347_v11 = vld [vmem:[#allocation8 + $0x10] sm:$0xff]  ;;  %1153 = vmatprep.subr.bf16.mxu0 %v1152_v3  ;;  %v1184_v12 = vpack.c.bf16 %v378_v10, %v377_v9  ;;  %v348_v13 = vld [vmem:[#allocation8 + $0x18] sm:$0xff]  ;;  %v365_v14 = vld [vmem:[#allocation8 + $0xa0] sm:$0xff]  ;;  %p1486_p2 = scmp.ne.s32.totalorder %s1876_s9, %s1485_s24  ;;  %p1976_p11 = scmp.ne.s32.totalorder %s1961_s8, 0 }
  0x9c   : > { %v366_v15 = vld [vmem:[#allocation8 + $0xa8] sm:$0xff]  ;;  %1155 = vmatpush3.bf16.msra.mxu0 %v1154_v7  ;;  %v1158_v16 = vpack.c.bf16 %v348_v13, %v347_v11  ;;  %v379_v17 = vld [vmem:[#allocation8 + $0x110] sm:$0xff]  ;;  %v380_v18 = vld [vmem:[#allocation8 + $0x118] sm:$0xff]  ;;  %s1567_s14 = smov [#allocation10]  }
  0x9d   : > { %1157 = vmatprep.subr.bf16.mxu0 %v1156_v8  ;;  %1185 = vmatprep.subr.bf16.mxu1 %v1184_v12  ;;  %v1160_v19 = vpack.c.bf16 %v366_v15, %v365_v14  ;;  %v1188_v20 = vpack.c.bf16 %v380_v18, %v379_v17  ;;  %v349_v21 = vld [vmem:[#allocation8 + $0x20] sm:$0xff]  ;;  %v350_v22 = vld [vmem:[#allocation8 + $0x28] sm:$0xff]  ;;  %v367_v23 = vld [vmem:[#allocation8 + $0xb0] sm:$0xff]  ;;  %p1487_p12 = pnand %p1486_p2, %p1976_p11  ;;  %s1489_s26 = sshll.u32 %s1567_s14, 4  ;;  %s1490_s26 = int_to_ptr.vmem [resolvable:$false] %s1489_s26 }
  0x9e   : > { %1187 = vmatpush3.bf16.msra.mxu1 %v1184_v12  ;;  %v368_v24 = vld [vmem:[#allocation8 + $0xb8] sm:$0xff]  ;;  %v381_v25 = vld [vmem:[#allocation8 + $0x120] sm:$0xff]  ;;  %v382_v26 = vld [vmem:[#allocation8 + $0x128] sm:$0xff]  ;;  %v1162_v28 = vpack.c.bf16 %v350_v22, %v349_v21  ;;  %s1491_s6 = scalar_lea.vmem %s1490_s26, 512  ;;  %p1492_p3 = scmp.lt.s32.totalorder %s1876_s9, %s1490_s26 }
  0x9f   : > { %1189 = vmatprep.subr.bf16.mxu1 %v1188_v20  ;;  %v1192_v27 = vpack.c.bf16 %v382_v26, %v381_v25  ;;  %v383_v29 = vld [vmem:[#allocation8 + $0x130] sm:$0xff]  ;;  %v384_v30 = vld [vmem:[#allocation8 + $0x138] sm:$0xff]  ;;  %v1164_v31 = vpack.c.bf16 %v368_v24, %v367_v23  ;;  %v369_v34 = vld [vmem:[#allocation8 + $0xc0] sm:$0xff]  ;;  %p1488_p13 = pneg %p1487_p12  ;;  %p1493_p8 = scmp.lt.s32.totalorder %s1491_s6, %s1485_s24 }
  0xa0   : > { %1159 = vmatpush3.bf16.msra.mxu0 %v1158_v16  ;;  %v351_v32 = vld [vmem:[#allocation8 + $0x30] sm:$0xff]  ;;  %v352_v33 = vld [vmem:[#allocation8 + $0x38] sm:$0xff]  ;;  %v370_v35 = vld [vmem:[#allocation8 + $0xc8] sm:$0xff]  ;;  %v1196_v36 = vpack.c.bf16 %v384_v30, %v383_v29 }
  0xa1   : > { %1161 = vmatprep.subr.bf16.mxu0 %v1160_v19  ;;  %v1166_v37 = vpack.c.bf16 %v352_v33, %v351_v32  ;;  %v385_v38 = vld [vmem:[#allocation8 + $0x140] sm:$0xff]  ;;  %v386_v39 = vld [vmem:[#allocation8 + $0x148] sm:$0xff]  ;;  %v1168_v40 = vpack.c.bf16 %v370_v35, %v369_v34  ;;  %v371_v43 = vld [vmem:[#allocation8 + $0xd0] sm:$0xff]  ;;  %p1494_p5 = por %p1493_p8, %p1492_p3 }
  0xa2   : > { %1191 = vmatpush3.bf16.msra.mxu1 %v1188_v20  ;;  %v353_v41 = vld [vmem:[#allocation8 + $0x40] sm:$0xff]  ;;  %v354_v42 = vld [vmem:[#allocation8 + $0x48] sm:$0xff]  ;;  %v372_v44 = vld [vmem:[#allocation8 + $0xd8] sm:$0xff]  ;;  %v1200_v45 = vpack.c.bf16 %v386_v39, %v385_v38 }
  0xa3   : > { %1193 = vmatprep.subr.bf16.mxu1 %v1192_v27  ;;  %v341_v46 = vld [vmem:[%s285_s17] sm:$0xff]  ;;  %v1170_v47 = vpack.c.bf16 %v354_v42, %v353_v41  ;;  %v388_v49 = vld [vmem:[#allocation8 + $0x158] sm:$0xff]  ;;  %v1172_v50 = vpack.c.bf16 %v372_v44, %v371_v43  ;;  %v374_v55 = vld [vmem:[#allocation8 + $0xe8] sm:$0xff]  ;;  %p1495_p9 = pnand %p1494_p5, %p1488_p13 }
  0xa4   : > { %1163 = vmatpush3.bf16.msra.mxu0 %v1162_v28  ;;  %v387_v48 = vld [vmem:[#allocation8 + $0x150] sm:$0xff]  ;;  %464 = vmatprep.mubr.f32.mxu0 %v341_v46  ;;  %v356_v52 = vld [vmem:[#allocation8 + $0x58] sm:$0xff]  ;;  %v373_v54 = vld [vmem:[#allocation8 + $0xe0] sm:$0xff] }
  0xa5   : > { %1165 = vmatprep.subr.bf16.mxu0 %v1164_v31  ;;  %v355_v51 = vld [vmem:[#allocation8 + $0x50] sm:$0xff]  ;;  %v1204_v56 = vpack.c.bf16 %v388_v49, %v387_v48  ;;  %v389_v58 = vld [vmem:[#allocation8 + $0x160] sm:$0xff]  ;;  %v390_v59 = vld [vmem:[#allocation8 + $0x168] sm:$0xff]  ;;  %v1176_v60 = vpack.c.bf16 %v374_v55, %v373_v54 }
  0xa6   : > { %1195 = vmatpush3.bf16.msra.mxu1 %v1192_v27  ;;  %v343_v53 = vld [vmem:[%s294_s1] sm:$0xff]  ;;  %v1174_v57 = vpack.c.bf16 %v356_v52, %v355_v51  ;;  %v358_v62 = vld [vmem:[#allocation8 + $0x68] sm:$0xff]  ;;  %v376_v0 = vld [vmem:[#allocation8 + $0xf8] sm:$0xff]  ;;  %v1208_v1 = vpack.c.bf16 %v390_v59, %v389_v58 }
  0xa7   : > { %1197 = vmatprep.subr.bf16.mxu1 %v1196_v36  ;;  %1079 = vmatprep.mubr.f32.mxu1 %v343_v53  ;;  %v357_v61 = vld [vmem:[#allocation8 + $0x60] sm:$0xff]  ;;  %v375_v63 = vld [vmem:[#allocation8 + $0xf0] sm:$0xff]  ;;  %v392_v4 = vld [vmem:[#allocation8 + $0x178] sm:$0xff] }
  0xa8   : > { %1167 = vmatpush3.bf16.msra.mxu0 %v1166_v37  ;;  %v1178_v2 = vpack.c.bf16 %v358_v62, %v357_v61  ;;  %v391_v3 = vld [vmem:[#allocation8 + $0x170] sm:$0xff]  ;;  %v1180_v5 = vpack.c.bf16 %v376_v0, %v375_v63  ;;  %v360_v7 = vld [vmem:[#allocation8 + $0x78] sm:$0xff]  ;;  %v564_v14 = vld [vmem:[#allocation8 + $0x180] sm:$0xff] }
  0xa9   : > { %1169 = vmatprep.subr.bf16.mxu0 %v1168_v40  ;;  %v359_v6 = vld [vmem:[#allocation8 + $0x70] sm:$0xff]  ;;  %v1212_v8 = vpack.c.bf16 %v392_v4, %v391_v3  ;;  %v342_v11 = vld [vmem:[%s285_s17 + $0x8] sm:$0xff]  ;;  %v568_v20 = vld [vmem:[#allocation8 + $0x1a0] sm:$0xff] }
  0xaa   : > { %1199 = vmatpush3.bf16.msra.mxu1 %v1196_v36  ;;  %v1182_v9 = vpack.c.bf16 %v360_v7, %v359_v6  ;;  %v339_v10 = vld [vmem:[%s276_s28] sm:$0xff]  ;;  %v344_v12 = vld [vmem:[%s294_s1 + $0x8] sm:$0xff] }
  0xab   : > { %1201 = vmatprep.subr.bf16.mxu1 %v1200_v45  ;;  %v340_v13 = vld [vmem:[%s276_s28 + $0x8] sm:$0xff]  ;;  %v566_v17 = vld [vmem:[#allocation8 + $0x190] sm:$0xff]  ;;  %v572_v26 = vld [vmem:[#allocation8 + $0x1c0] sm:$0xff] }
  0xac   : > { %1171 = vmatpush3.bf16.msra.mxu0 %v1170_v47  ;;  %v565_v15 = vld [vmem:[#allocation8 + $0x188] sm:$0xff]  ;;  %v567_v18 = vld [vmem:[#allocation8 + $0x198] sm:$0xff]  ;;  %v570_v23 = vld [vmem:[#allocation8 + $0x1b0] sm:$0xff] }
  0xad   : > { %1173 = vmatprep.subr.bf16.mxu0 %v1172_v50  ;;  %v1216_v16 = vpack.c.bf16 %v565_v15, %v564_v14  ;;  %v1220_v19 = vpack.c.bf16 %v567_v18, %v566_v17  ;;  %v569_v21 = vld [vmem:[#allocation8 + $0x1a8] sm:$0xff]  ;;  %v571_v24 = vld [vmem:[#allocation8 + $0x1b8] sm:$0xff]  ;;  %v574_v29 = vld [vmem:[#allocation8 + $0x1d0] sm:$0xff] }
  0xae   : > { %1203 = vmatpush3.bf16.msra.mxu1 %v1200_v45  ;;  %v1224_v22 = vpack.c.bf16 %v569_v21, %v568_v20  ;;  %v1228_v25 = vpack.c.bf16 %v571_v24, %v570_v23  ;;  %v573_v27 = vld [vmem:[#allocation8 + $0x1c8] sm:$0xff]  ;;  %v575_v30 = vld [vmem:[#allocation8 + $0x1d8] sm:$0xff]  ;;  %v576_v32 = vld [vmem:[#allocation8 + $0x1e0] sm:$0xff] }
  0xaf   : > { %1205 = vmatprep.subr.bf16.mxu1 %v1204_v56  ;;  %v1232_v28 = vpack.c.bf16 %v573_v27, %v572_v26  ;;  %v1236_v31 = vpack.c.bf16 %v575_v30, %v574_v29  ;;  %v577_v33 = vld [vmem:[#allocation8 + $0x1e8] sm:$0xff]  ;;  %v578_v35 = vld [vmem:[#allocation8 + $0x1f0] sm:$0xff]  ;;  %v579_v36 = vld [vmem:[#allocation8 + $0x1f8] sm:$0xff] }
  0xb0   : > { %1175 = vmatpush3.bf16.msra.mxu0 %v1174_v57  ;;  %v1240_v34 = vpack.c.bf16 %v577_v33, %v576_v32  ;;  %v1244_v37 = vpack.c.bf16 %v579_v36, %v578_v35  ;;  %v937_v40 = vld [vmem:[%s1928_s4] ss:$0 sm:$0xff]  ;;  %v678_v62 = vld [vmem:[#allocation8 + $0x208] sm:$0xff]  ;;  %v679_v0 = vld [vmem:[#allocation8 + $0x210] sm:$0xff] }
  0xb1   : > { %1177 = vmatprep.subr.bf16.mxu0 %v1176_v60  ;;  %v677_v61 = vld [vmem:[#allocation8 + $0x200] sm:$0xff]  ;;  %v682_v4 = vld [vmem:[#allocation8 + $0x228] sm:$0xff]  ;;  %v683_v6 = vld [vmem:[#allocation8 + $0x230] sm:$0xff] }
  0xb2   : > { %1207 = vmatpush3.bf16.msra.mxu1 %v1204_v56  ;;  %v1248_v63 = vpack.c.bf16 %v678_v62, %v677_v61  ;;  %v681_v3 = vld [vmem:[#allocation8 + $0x220] sm:$0xff]  ;;  %v684_v7 = vld [vmem:[#allocation8 + $0x238] sm:$0xff]  ;;  %v691_v18 = vld [vmem:[#allocation8 + $0x270] sm:$0xff] }
  0xb3   : > { %1209 = vmatprep.subr.bf16.mxu1 %v1208_v1  ;;  %v689_v15 = vld [vmem:[#allocation8 + $0x260] sm:$0xff] }
  0xb4   : > { %1179 = vmatpush3.bf16.msra.mxu0 %v1178_v2  ;;  %v941_v21 = vld [vmem:[%s1928_s4 + $0x1] ss:$0 sm:$0xff]  ;;  %v945_v36 = vld [vmem:[%s1928_s4 + $0x2] ss:$0 sm:$0xff] }
  0xb5   : > { %1181 = vmatprep.subr.bf16.mxu0 %v1180_v5  ;;  %v1256_v5 = vpack.c.bf16 %v682_v4, %v681_v3 }
  0xb6   : > { %1211 = vmatpush3.bf16.msra.mxu1 %v1208_v1  ;;  %v680_v1 = vld [vmem:[#allocation8 + $0x218] sm:$0xff] }
  0xb7   : > { %1213 = vmatprep.subr.bf16.mxu1 %v1212_v8  ;;  %v1252_v2 = vpack.c.bf16 %v680_v1, %v679_v0 }
  0xb8   : > { %1183 = vmatpush3.bf16.msra.mxu0 %v1182_v9  ;;  %v685_v9 = vld [vmem:[#allocation8 + $0x240] sm:$0xff] }
  0xb9   : > { %1217 = vmatprep.subr.bf16.mxu0 %v1216_v16 }
  0xba   : > { %1215 = vmatpush3.bf16.msra.mxu1 %v1212_v8  ;;  %v1260_v8 = vpack.c.bf16 %v684_v7, %v683_v6 }
  0xbb   : > { %465 = vmatmul.mubr.f32.vlgmr.msra.gmra.mrb[0].mxu0 %v339_v10  ;;  %1249 = vmatprep.subr.bf16.mxu1 %v1248_v63  ;;  %v686_v10 = vld [vmem:[#allocation8 + $0x248] sm:$0xff] }
  0xbc   : > { %469 = vmatprep.mubr.f32.mxu0 %v342_v11  ;;  %1219 = vmatpush3.bf16.msra.mxu0 %v1216_v16  ;;  %v1264_v11 = vpack.c.bf16 %v686_v10, %v685_v9  ;;  %v690_v16 = vld [vmem:[#allocation8 + $0x268] sm:$0xff] }
  0xbd   : > { %1080 = vmatmul.mubr.f32.vlgmr.msra.gmra.mrb[0].mxu1 %v344_v12  ;;  %1221 = vmatprep.subr.bf16.mxu0 %v1220_v19  ;;  %v687_v12 = vld [vmem:[#allocation8 + $0x250] sm:$0xff]  ;;  %v1272_v17 = vpack.c.bf16 %v690_v16, %v689_v15 }
  0xbe   : > { %1251 = vmatpush3.bf16.msra.mxu1 %v1248_v63 }
  0xbf   : > { %470 = vmatmul.mubr.f32.gmra.mrb[2].mxu0 %v340_v13  ;;  %1253 = vmatprep.subr.bf16.mxu1 %v1252_v2  ;;  %v688_v13 = vld [vmem:[#allocation8 + $0x258] sm:$0xff] }
  0xc0   : > { %1223 = vmatpush3.bf16.msra.mxu0 %v1220_v19  ;;  %v1268_v14 = vpack.c.bf16 %v688_v13, %v687_v12  ;;  %v692_v19 = vld [vmem:[#allocation8 + $0x278] sm:$0xff] }
  0xc1   : > { %1225 = vmatprep.subr.bf16.mxu0 %v1224_v22  ;;  %v1276_v20 = vpack.c.bf16 %v692_v19, %v691_v18 }
  0xc2   : > { %1255 = vmatpush3.bf16.msra.mxu1 %v1252_v2 }
  0xc3   : > { %1257 = vmatprep.subr.bf16.mxu1 %v1256_v5 }
  0xc4   : > { %1227 = vmatpush3.bf16.msra.mxu0 %v1224_v22 }
  0xc5   : > { %1229 = vmatprep.subr.bf16.mxu0 %v1228_v25 }
  0xc6   : > { %1259 = vmatpush3.bf16.msra.mxu1 %v1256_v5 }
  0xc7   : > { %1261 = vmatprep.subr.bf16.mxu1 %v1260_v8 }
  0xc8   : > { %1231 = vmatpush3.bf16.msra.mxu0 %v1228_v25 }
  0xc9   : > { %1233 = vmatprep.subr.bf16.mxu0 %v1232_v28 }
  0xca   : > { %1263 = vmatpush3.bf16.msra.mxu1 %v1260_v8 }
  0xcb   : > { %1265 = vmatprep.subr.bf16.mxu1 %v1264_v11 }
  0xcc   : > { %1235 = vmatpush3.bf16.msra.mxu0 %v1232_v28 }
  0xcd   : > { %1237 = vmatprep.subr.bf16.mxu0 %v1236_v31 }
  0xce   : > { %1267 = vmatpush3.bf16.msra.mxu1 %v1264_v11 }
  0xcf   : > { %1269 = vmatprep.subr.bf16.mxu1 %v1268_v14 }
  0xd0   : > { %1239 = vmatpush3.bf16.msra.mxu0 %v1236_v31 }
  0xd1   : > { %1241 = vmatprep.subr.bf16.mxu0 %v1240_v34 }
  0xd2   : > { %1271 = vmatpush3.bf16.msra.mxu1 %v1268_v14 }
  0xd3   : > { %1273 = vmatprep.subr.bf16.mxu1 %v1272_v17 }
  0xd4   : > { %1243 = vmatpush3.bf16.msra.mxu0 %v1240_v34 }
  0xd5   : > { %1245 = vmatprep.subr.bf16.mxu0 %v1244_v37 }
  0xd6   : > { %1275 = vmatpush3.bf16.msra.mxu1 %v1272_v17 }
  0xd7   : > { %1277 = vmatprep.subr.bf16.mxu1 %v1276_v20 }
  0xd8   : > { %1247 = vmatpush3.bf16.msra.mxu0 %v1244_v37 }
  0xda   : > { %1279 = vmatpush3.bf16.msra.mxu1 %v1276_v20 }
 0x18e   : > { %v987_v38 = vpop.f32.mrb[0].mxu0 }
 0x18f   : > { %v988_v39 = vpop.f32.mrb[1].mxu0 }
 0x190   : > { %v989_v41 = vadd.f32 %v988_v39, %v987_v38  ;;  %v1081_v42 = vpop.f32.mrb[0].mxu1 }
 0x191   : > { %v541_v43 = vpop.f32.mrb[1].mxu1 }
 0x192   : > { %v990_v44 = vpop.f32.mrb[2].mxu0  ;;  %v467_v45 = vadd.f32 %v989_v41, %v937_v40 }
 0x193   : > { %v991_v46 = vpop.f32.mrb[3].mxu0 }
 0x194   : > { %v992_v47 = vadd.f32 %v991_v46, %v990_v44  ;;  %v542_v48 = vadd.f32 %v541_v43, %v467_v45 }
 0x196   : > { %v472_v49 = vadd.f32 %v992_v47, %v937_v40  ;;  %v938_v50 = vmul.f32 -1.442695, %v542_v48 }
 0x198   : > { %v547_v51 = vadd.f32 %v1081_v42, %v472_v49  ;;  %1351 = vpow2.f32 %v938_v50 }
 0x19a   : > { %v939_v52 = vmul.f32 -1.442695, %v547_v51 }
 0x19c   : > { %1353 = vpow2.f32 %v939_v52 }
 0x1a2   : > { %v1352_v53 = vpop.eup %1351 }
 0x1a3   : > { %v556_v54 = vadd.f32 1.0, %v1352_v53 }
 0x1a5   : > { %1355 = vrcp.f32 %v556_v54 }
 0x1a6   : > { %v1354_v55 = vpop.eup %1353 }
 0x1a7   : > { %v557_v56 = vadd.f32 1.0, %v1354_v55 }
 0x1a9   : > { %1357 = vrcp.f32 %v557_v56 }
 0x1af   : > { %v1356_v57 = vpop.eup %1355 }
 0x1b0   : > { %v562_v58 = vmul.f32 %v1356_v57, %v542_v48 }
 0x1b2   : > { %1114 = vmatprep.mubr.f32.mxu0 %v562_v58 }
 0x1b3   : > { %v1358_v59 = vpop.eup %1357 }
 0x1b4   : > { %v563_v60 = vmul.f32 %v1358_v59, %v547_v51 }
 0x1b6   : > { %1115 = vmatmul.mubr.f32.vlgmr.msra.gmra.mrb[4].mxu0 %v563_v60 }
 0x289   : > { %v1116_v22 = vpop.f32.mrb[4].mxu0 }
 0x28a   : > { %v660_v23 = vadd.f32 %v1116_v22, %v941_v21  ;;  %v654_v24 = vpop.f32.mrb[5].mxu0 }
 0x28b   : > { %v655_v25 = vadd.f32 %v941_v21, %v654_v24 }
 0x28c   : > { %v943_v26 = vmul.f32 -1.442695, %v660_v23 }
 0x28d   : > { %v942_v27 = vmul.f32 -1.442695, %v655_v25 }
 0x28e   : > { %1359 = vpow2.f32 %v943_v26 }
 0x28f   : > { %1361 = vpow2.f32 %v942_v27 }
 0x298   : > { %v1360_v28 = vpop.eup %1359 }
 0x299   : > { %v1362_v29 = vpop.eup %1361  ;;  %v670_v30 = vadd.f32 1.0, %v1360_v28 }
 0x29a   : > { %v669_v31 = vadd.f32 1.0, %v1362_v29 }
 0x29b   : > { %1363 = vrcp.f32 %v670_v30 }
 0x29c   : > { %1365 = vrcp.f32 %v669_v31 }
 0x2a5   : > { %v1364_v32 = vpop.eup %1363 }
 0x2a6   : > { %v1366_v33 = vpop.eup %1365  ;;  %v676_v35 = vmul.f32 %v1364_v32, %v660_v23 }
 0x2a7   : > { %v675_v34 = vmul.f32 %v1366_v33, %v655_v25 }
 0x2a9   : > { %1149 = vmatprep.mubr.f32.mxu1 %v675_v34 }
 0x2aa   : > { %1150 = vmatmul.mubr.f32.vlgmr.msra.gmra.mrb[2].mxu1 %v676_v35 }
 0x37d   : > { %v1151_v37 = vpop.f32.mrb[2].mxu1 }
 0x37e   : > { %v773_v38 = vadd.f32 %v1151_v37, %v945_v36  ;;  %v767_v39 = vpop.f32.mrb[3].mxu1 }
 0x37f   : > { %v768_v40 = vadd.f32 %v945_v36, %v767_v39 }
 0x380   : > { %777 = vst [vmem:[%s334_s21 + $0x8] sm:$0xff] %v773_v38 }
 0x381   : > { %776 = vst [vmem:[%s334_s21] sm:$0xff] %v768_v40 }
 0x382   : > { %1498 = shalt.err (!%p1495_p9)
}
 0x383   : > { %s1499_s22 = scalar_lea.hbm %s1881_s30, 256  ;;  %s1503_s0 = scalar_lea.hbm %s1929_s5, 1024 }
 0x384   : > { %p1500_p6 = scmp.ne.s32.totalorder %s1881_s30, %s1499_s22  ;;  %p1504_p10 = scmp.lt.u32.totalorder %s1881_s30, %s1929_s5 }
 0x385   : > { %p1505_p0 = scmp.lt.u32.totalorder %s1503_s0, %s1499_s22  ;;  %p1507_p2 = scmp.lt.u32.totalorder %s1499_s22, %s1881_s30 }
 0x386   : > { %p1501_p4 = pnand %p1500_p6, %p1976_p11 }
 0x387   : > { %p1506_p1 = por %p1505_p0, %p1504_p10 }
 0x388   : > { %p1502_p7 = pneg %p1501_p4 }
 0x389   : > { %p1508_p12 = por %p1507_p2, %p1506_p1 }
 0x38b   : > { %p1509_p13 = pnand %p1508_p12, %p1502_p7 }
 0x38d   : > { %1512 = shalt.err (!%p1509_p13)
}
 0x38e   : > { %s1568_s1 = smov 128   ;;  %s1569_s16 = smov 8  }
 0x38f   : > { %1290 = dma.vmem_to_hbm [thread:$0]  (%p1976_p11), %s1876_s9, 256, %s1881_s30, %s779_s27, %s1568_s1, %s1568_s1, %s1569_s16  }
 0x390 PF: > { %s1977_s25 = sld [smem:[#allocation17_spill]]  ;;  %s1978_s18 = sld [smem:[#allocation15_spill]] }
 0x391   : > { %s1979_s20 = sld [smem:[#allocation20_spill]] }
 0x396   : > { %p1313_p3 = scmp.ge.s32.totalorder %s1977_s25, 2  ;;  %s807_s21 = sand.u32 1, %s1978_s18  }
 0x397   : > { %p1980_p8 = scmp.ne.s32.totalorder %s1979_s20, 0  ;;  %s808_s10 = scalar_lea.sflag [#allocation4], %s807_s21 }
 0x399   : > { %p1307_p5 = pnand %p1313_p3, %p1980_p8 }
 0x39b   : > { %1542 = dma.done.wait (!%p1307_p5), %s808_s10, 256  }
 0x39c   : > { %1544 = vsyncadd (!%p1307_p5), %s808_s10, 4294967040  ;;  %s1981_s21 = sld [smem:[#allocation18_spill]]  ;;  %s1982_s12 = sld [smem:[#allocation16_spill]] }
 0x39d   : > { %s1983_s20 = sld [smem:[#allocation19_spill]]  ;;  %s1984_s18 = smov %s1551_s19 }
 0x3a2   : > { %p22_p9 = scmp.ge.s32.totalorder %s1981_s21, 6   ;;  %s1985_s19 = smov %s1982_s12 }
 0x3a4   :  { %24 = sbr.rel (!%p22_p9) target bundleno = 11 (0xb), region = 115 }
 0x3ab   :  { %813 = vsyncpa [#allocation3], 1 }
 0x3ac   :  { %815 = vsyncpa [#allocation3 + $0x1], 1 }
 0x3ad   :  { %816 = vsyncpa [#allocation6], 1 }
 0x3ae   :  { %818 = vsyncpa [#allocation6 + $0x1], 1 }
 0x3af   :  { %819 = vsyncpa [#allocation9], 1 }
 0x3b0   :  { %820 = vsyncpa [#allocation4], 1 }
 0x3b1   :  { %822 = vsyncpa [#allocation4 + $0x1], 1 }

</bundles_post_ra>
